<compile_context>
chip_gen: v7x
topology: tpu7x:2x2x1
jax: 0.10.0
libtpu: 0.0.40
codegen_flags: <defaults>
</compile_context>

<pallas_src>
import functools

import numpy as np
import jax
import jax.numpy as jnp
from jax import lax
from jax.experimental import pallas as pl
from jax.experimental.pallas import tpu as pltpu


# --------------------------------------------------------------------------
# Roll-direction probe: make the kernel robust to the rotate convention of
# pltpu.roll across jax versions.  We need shifted[l] = z[(l + s) % n].
# --------------------------------------------------------------------------
def _roll_probe_kernel(x_ref, o_ref):
    o_ref[...] = pltpu.roll(x_ref[...], 1, 1)


_ROLL_DIR = None


def _roll_dir():
    """Returns d such that pltpu.roll(z, (d*s) % n, axis) gives out[l] = z[(l+s) % n]."""
    global _ROLL_DIR
    if _ROLL_DIR is None:
        n = 256
        x = jnp.asarray(np.tile(np.arange(n, dtype=np.float32), (8, 1)))
        r = pl.pallas_call(
            _roll_probe_kernel,
            out_shape=jax.ShapeDtypeStruct((8, n), jnp.float32),
        )(x)
        v = int(jax.device_get(r)[0, 0])
        if v == n - 1:        # np.roll convention: out[i] = in[(i - shift) % n]
            _ROLL_DIR = -1
        elif v == 1:          # out[i] = in[(i + shift) % n]
            _ROLL_DIR = 1
        else:
            raise RuntimeError(f"unexpected pltpu.roll semantics (probe got {v})")
    return _ROLL_DIR


# --------------------------------------------------------------------------
# Fused MEModule kernel (N_blk lane-batched images per grid step)
# --------------------------------------------------------------------------
def _me_kernel(x_ref, slab_ref, o_ref, tap_ref, *,
               cin, mid, side, cout, img_h, img_w, hw, layout, roll_shifts):
    cz = mid + side
    n_lanes = x_ref.shape[1]

    # Static slices of the single packed weight/bias slab (one DMA'd input).
    w1 = slab_ref[layout["w1"]:layout["w1"] + mid, 0:cin]          # compress 1x1 (+BN, shuffle)
    wm = slab_ref[layout["wm"]:layout["wm"] + side, 0:mid]         # s_merge 1x1 (+BN)
    wc = slab_ref[layout["wc"]:layout["wc"] + cz, 0:9 * cz]        # fused dw3x3 + s_conv3x3
    we = slab_ref[layout["we"]:layout["we"] + mid, 0:side]         # s_evolve 1x1 (+BN)
    w3 = slab_ref[layout["w3"]:layout["w3"] + cout, 0:mid]         # expand group 1x1 (+BN)
    b1 = slab_ref[layout["b1"]:layout["b1"] + mid, 0:1]
    bm = slab_ref[layout["bm"]:layout["bm"] + side, 0:1]
    b2 = slab_ref[layout["b2"]:layout["b2"] + mid, 0:1]
    bs = slab_ref[layout["bs"]:layout["bs"] + side, 0:1]
    be = slab_ref[layout["be"]:layout["be"] + mid, 0:1]
    b3 = slab_ref[layout["b3"]:layout["b3"] + cout, 0:1]

    # compress_conv1 (+BN, channel shuffle folded) + ReLU              -> (mid, lanes)
    h = jnp.maximum(
        jnp.dot(w1, x_ref[...], preferred_element_type=jnp.float32) + b1, 0.0)
    # s_merge 1x1 (+BN) + ReLU                                         -> (side, lanes)
    y = jnp.maximum(jnp.dot(wm, h, preferred_element_type=jnp.float32) + bm, 0.0)
    z = jnp.concatenate([h, y], axis=0)                              # (cz, lanes)

    # Per-image spatial coordinates: lane axis carries N_blk images back-to-back.
    lane = lax.broadcasted_iota(jnp.int32, (1, n_lanes), 1)
    img = lane // hw
    pix = lane - img * hw
    row = pix // img_w
    col = pix - row * img_w
    row_ok = {-1: row >= 1, 0: None, 1: row < img_h - 1}
    col_ok = {-1: col >= 1, 0: None, 1: col < img_w - 1}

    # 9 masked spatial taps (lane rolls on the XLU), streamed into VMEM scratch
    # so the live vreg set stays at ~one tap.  Boundary masks also zero every
    # tap that would cross an image boundary, so lane-batching is exact.
    t = 0
    for dh in (-1, 0, 1):
        for dwd in (-1, 0, 1):
            if dh == 0 and dwd == 0:
                zt = z
            else:
                rolled = pltpu.roll(z, roll_shifts[t], 1)
                conds = [m for m in (row_ok[dh], col_ok[dwd]) if m is not None]
                mask = conds[0]
                if len(conds) == 2:
                    mask = jnp.logical_and(mask, conds[1])
                zt = jnp.where(mask, rolled, 0.0)
            tap_ref[t * cz:(t + 1) * cz, :] = zt
            t += 1

    # dw_conv2 (+BN, no ReLU) and s_conv 3x3 (+BN, ReLU) in ONE MXU matmul.
    comb = jnp.dot(wc, tap_ref[...], preferred_element_type=jnp.float32)   # (cz, lanes)
    dw = comb[0:mid] + b2
    yc = jnp.maximum(comb[mid:] + bs, 0.0)

    # s_evolve 1x1 (+BN) + numerically-stable sigmoid (EUP exp + approx recip).
    e = jnp.dot(we, yc, preferred_element_type=jnp.float32) + be            # (mid, lanes)
    ena = jnp.exp(-jnp.abs(e))                       # in (0, 1], no overflow
    inv = pl.reciprocal(1.0 + ena, approx=True)
    gate = jnp.where(e >= 0, inv, ena * inv)

    # gate main branch, expand group 1x1 (+BN), residual add, ReLU.
    g = dw * gate
    out = jnp.dot(w3, g, preferred_element_type=jnp.float32) + b3 + x_ref[...]
    o_ref[...] = jnp.maximum(out, 0.0).astype(o_ref.dtype)


def _choose_n_blk(n, hw, max_lanes, min_grid=2):
    """Images per grid step: largest divisor of n with lane-dense blocks that
    keeps the grid >= min_grid (v7x megacore) and lane width <= max_lanes."""
    cands = []
    for nb in range(1, n + 1):
        if n % nb:
            continue
        if nb != n and (nb * hw) % 128 != 0:   # block lane dim must be 128-aligned
            continue
        cands.append(nb)
    def key(nb):
        return (nb * hw <= max_lanes, (n // nb) >= min_grid or n < min_grid, nb)
    return max(cands, key=key)


def me_module_forward(x_nchw, slab, layout, meta, *, max_lanes=16384):
    """MEModule forward (downsample=False). x_nchw: (N, C, H, W) f32."""
    n, c, h, w = x_nchw.shape
    hw = h * w
    mid, side, cout = meta["mid"], meta["side"], meta["cout"]
    assert c == meta["cin"], "folded params do not match input channel count"
    assert c == cout, "non-downsample MEModule requires in_channels == out_channels"

    n_blk = _choose_n_blk(n, hw, max_lanes)
    n_lanes = n_blk * hw
    grid = n // n_blk

    d = _roll_dir()
    taps = [(dh, dwd) for dh in (-1, 0, 1) for dwd in (-1, 0, 1)]
    # NOTE: modulus is the full lane width (N_blk images), not a single image.
    roll_shifts = tuple((d * (dh * w + dwd)) % n_lanes for dh, dwd in taps)

    kernel = functools.partial(
        _me_kernel, cin=c, mid=mid, side=side, cout=cout,
        img_h=h, img_w=w, hw=hw, layout=layout, roll_shifts=roll_shifts)

    # Channel-major, image-then-pixel along the lane axis (lane-dense layout).
    x_cm = jnp.transpose(x_nchw.reshape(n, c, hw), (1, 0, 2)).reshape(c, n * hw)

    out_cm = pl.pallas_call(
        kernel,
        out_shape=jax.ShapeDtypeStruct((cout, n * hw), jnp.float32),
        grid=(grid,),
        in_specs=[pl.BlockSpec((c, n_lanes), lambda i: (0, i)),
                  pl.BlockSpec(slab.shape, lambda i: (0, 0))],
        out_specs=pl.BlockSpec((cout, n_lanes), lambda i: (0, i)),
        scratch_shapes=[pltpu.VMEM((9 * (mid + side), n_lanes), jnp.float32)],
        compiler_params=pltpu.CompilerParams(dimension_semantics=("parallel",)),
    )(x_cm, slab)

    return jnp.transpose(out_cm.reshape(cout, n, hw), (1, 0, 2)).reshape(n, cout, h, w)


# ----------------------------- param folding ---------------------------------
def _bn_fold(gamma, beta, mean, var, eps=1e-5):
    scale = np.asarray(gamma) / np.sqrt(np.asarray(var) + eps)
    bias = np.asarray(beta) - np.asarray(mean) * scale
    return scale.astype(np.float32), bias.astype(np.float32)


def _group1x1_dense(w_oihw, groups):
    """(Cout, Cin//g, 1, 1) group-conv weight -> dense (Cout, Cin) block-diagonal."""
    wmat = np.asarray(w_oihw)[:, :, 0, 0]
    cout, cin_g = wmat.shape
    cout_g = cout // groups
    dense = np.zeros((cout, cin_g * groups), np.float32)
    for g in range(groups):
        dense[g * cout_g:(g + 1) * cout_g, g * cin_g:(g + 1) * cin_g] = \
            wmat[g * cout_g:(g + 1) * cout_g, :]
    return dense


def fold_params(w1_t, bn1, wdw_t, bn2, w3_t, bn3, wm_t, bnm, ws_t, bns, we_t, bne,
                *, g1, groups):
    """Fold BN into weights, bake in the channel shuffle, fuse the depthwise 3x3
    and s_conv 3x3 into one block-structured matrix, and pack EVERYTHING into a
    single lane-dense f32 slab + a static row-layout dict."""
    mid = int(w1_t.shape[0])
    side = int(wm_t.shape[0])
    cin = int(w1_t.shape[1]) * g1
    cout = int(w3_t.shape[0])
    cz = mid + side

    s1, b1 = _bn_fold(*bn1); s2, b2 = _bn_fold(*bn2); s3, b3 = _bn_fold(*bn3)
    sm, bm = _bn_fold(*bnm); ss, bs = _bn_fold(*bns); se, be = _bn_fold(*bne)

    # channel shuffle permutation: shuffled[j] = original[perm[j]]
    perm = np.arange(mid).reshape(g1, mid // g1).T.reshape(-1)

    w1 = _group1x1_dense(w1_t, g1) * s1[:, None]
    w1 = w1[perm]; b1 = b1[perm]
    wm = np.asarray(wm_t)[:, :, 0, 0] * sm[:, None]
    we = np.asarray(we_t)[:, :, 0, 0] * se[:, None]
    w3 = _group1x1_dense(w3_t, groups) * s3[:, None]

    # Combined per-tap weight: rows 0..mid-1 carry diag(wdw[:, t]) (depthwise),
    # rows mid.. carry the s_conv blocks; tap t = kh*3 + kw, columns grouped per tap.
    wdw9 = np.asarray(wdw_t)[:, 0].reshape(mid, 9) * s2[:, None]
    ws_k = np.asarray(ws_t) * ss[:, None, None, None]                   # (side, side, 3, 3)
    wc = np.zeros((cz, 9 * cz), np.float32)
    for t in range(9):
        kh, kw = divmod(t, 3)
        wc[np.arange(mid), t * cz + np.arange(mid)] = wdw9[:, t]
        wc[mid:, t * cz + mid:(t + 1) * cz] = ws_k[:, :, kh, kw]

    parts = dict(w1=w1, wm=wm, wc=wc, we=we, w3=w3,
                 b1=b1.reshape(-1, 1), bm=bm.reshape(-1, 1), b2=b2.reshape(-1, 1),
                 bs=bs.reshape(-1, 1), be=be.reshape(-1, 1), b3=b3.reshape(-1, 1))
    max_cols = max(p.shape[1] for p in parts.values())
    slab_w = max(128, int(-(-max_cols // 128)) * 128)

    rows, layout, r = [], {}, 0
    for name, p in parts.items():
        pr = int(-(-p.shape[0] // 8)) * 8          # 8-row (sublane) aligned segments
        buf = np.zeros((pr, slab_w), np.float32)
        buf[:p.shape[0], :p.shape[1]] = p
        rows.append(buf)
        layout[name] = r
        r += pr
    slab = np.concatenate(rows, axis=0)

    meta = dict(cin=cin, cout=cout, mid=mid, side=side)
    return jnp.asarray(slab, jnp.float32), layout, meta


# ------------------------ pure-JAX reference (NCHW) ---------------------------
def _conv_nchw(x, w_oihw, stride=1, pad=0, groups=1):
    return lax.conv_general_dilated(
        x, w_oihw, window_strides=(stride, stride),
        padding=((pad, pad), (pad, pad)),
        dimension_numbers=('NCHW', 'OIHW', 'NCHW'),
        feature_group_count=groups)


def _bn_ref(x, gamma, beta, mean, var, eps=1e-5):
    rs = lambda a: a.reshape(1, -1, 1, 1)
    return (x - rs(mean)) / jnp.sqrt(rs(var) + eps) * rs(gamma) + rs(beta)


def _shuffle_ref(x, groups):
    n, c, h, w = x.shape
    return x.reshape(n, groups, c // groups, h, w).swapaxes(1, 2).reshape(n, c, h, w)


def reference_forward(x, p):
    identity = x
    h = jax.nn.relu(_bn_ref(_conv_nchw(x, p['w1'], groups=p['g1']), *p['bn1']))
    h = _shuffle_ref(h, p['g1'])
    y = jax.nn.relu(_bn_ref(_conv_nchw(h, p['wm']), *p['bnm']))
    h = _bn_ref(_conv_nchw(h, p['wdw'], pad=1, groups=h.shape[1]), *p['bn2'])
    y = jax.nn.relu(_bn_ref(_conv_nchw(y, p['ws'], pad=1), *p['bns']))
    y = jax.nn.sigmoid(_bn_ref(_conv_nchw(y, p['we']), *p['bne']))
    h = h * y
    h = _bn_ref(_conv_nchw(h, p['w3'], groups=p['groups']), *p['bn3'])
    return jax.nn.relu(h + identity)


# --------------------------------- main ---------------------------------------
if __name__ == "__main__":
    # MEModule(in_channels=32, out_channels=32, side_channels=8, groups=2,
    #          downsample=False, ignore_group=False), BatchNorm in eval mode.
    in_channels, out_channels, side_channels = 32, 32, 8
    groups, downsample, ignore_group = 2, False, False
    mid = out_channels // 4
    g1 = 1 if ignore_group else groups
    N, H, W = 4, 16, 16    # 4 images -> 2 lane-batched per step (512 lanes), grid=(2,)

    keys = jax.random.split(jax.random.PRNGKey(0), 32)
    ki = iter(keys)

    def rnd(shape, scale=0.2):
        return jax.random.normal(next(ki), shape, jnp.float32) * scale

    def bn_params(ch):
        gamma = jax.random.uniform(next(ki), (ch,), jnp.float32, 0.5, 1.5)
        beta = rnd((ch,), 0.1)
        mean = rnd((ch,), 0.1)
        var = jax.random.uniform(next(ki), (ch,), jnp.float32, 0.5, 1.5)
        return gamma, beta, mean, var

    # PyTorch-layout (OIHW) weights + BN params, deterministic.
    w1_t = rnd((mid, in_channels // g1, 1, 1));        bn1 = bn_params(mid)
    wdw_t = rnd((mid, 1, 3, 3));                       bn2 = bn_params(mid)
    w3_t = rnd((out_channels, mid // groups, 1, 1));   bn3 = bn_params(out_channels)
    wm_t = rnd((side_channels, mid, 1, 1));            bnm = bn_params(side_channels)
    ws_t = rnd((side_channels, side_channels, 3, 3));  bns = bn_params(side_channels)
    we_t = rnd((mid, side_channels, 1, 1));            bne = bn_params(mid)

    slab, layout, meta = fold_params(w1_t, bn1, wdw_t, bn2, w3_t, bn3,
                                     wm_t, bnm, ws_t, bns, we_t, bne,
                                     g1=g1, groups=groups)

    x = jax.random.normal(next(ki), (N, in_channels, H, W), jnp.float32)

    out = me_module_forward(x, slab, layout, meta)
    out = jax.block_until_ready(out)

    ref = reference_forward(
        x, dict(w1=w1_t, bn1=bn1, wdw=wdw_t, bn2=bn2, w3=w3_t, bn3=bn3,
                wm=wm_t, bnm=bnm, ws=ws_t, bns=bns, we=we_t, bne=bne,
                g1=g1, groups=groups))
    # Tolerance accommodates the EUP approximate-reciprocal sigmoid gate and
    # MXU matmul accumulation; everything else is exact f32 math.
    np.testing.assert_allclose(np.asarray(out), np.asarray(ref), rtol=5e-3, atol=5e-3)
    print("KERNEL_OK")
</pallas_src>

<mosaic_0001>
module attributes {stable_mosaic.version = 11 : i64} {
  func.func @_roll_probe_kernel(%arg0: memref<8x256xf32, #tpu.memory_space<vmem>>, %arg1: memref<8x256xf32, #tpu.memory_space<vmem>>) attributes {dimension_semantics = [], scalar_prefetch = 0 : i64, scratch_operands = 0 : i64, tpu.core_type = #tpu.core_type<tc>} {
    %c0 = arith.constant 0 : index
    %c0_0 = arith.constant 0 : index
    %0 = vector.load %arg0[%c0, %c0_0] : memref<8x256xf32, #tpu.memory_space<vmem>>, vector<8x256xf32>
    %c1_i32 = arith.constant 1 : i32
    %1 = tpu.dynamic_rotate %0 by %c1_i32 dim 1 : vector<8x256xf32>, i32 -> vector<8x256xf32>
    %c0_1 = arith.constant 0 : index
    %c0_2 = arith.constant 0 : index
    %2 = vector.load %arg1[%c0_1, %c0_2] : memref<8x256xf32, #tpu.memory_space<vmem>>, vector<8x256xf32>
    tpu.vector_store %arg1[%c0_1, %c0_2], %1 {strides = array<i32>} : memref<8x256xf32, #tpu.memory_space<vmem>>, vector<8x256xf32>,
    return
  }
}

</mosaic_0001>

<bundles_post_ra>
// kernel: tpu_custom_call.1
= control target key start
LH: loop header
LB: loop body
LE: loop exit
PB: predicated region body
PF: predicated region fallthrough
CT: control target
= control target key end

     0   :  { %6 = vsyncpa [#allocation3], 0  ;;  %s137_s0 = inlined_call_operand.hbm [shape: f32[8,256], index: 0, kind: input, shape index: {}]   ;;  %s138_s1 = inlined_call_operand.hbm [shape: f32[8,256], index: 1, kind: output, shape index: {}]  }
   0x1   :  { %7 = vsyncpa [#allocation4], 0  ;;  %s100_s6 = smov [#allocation2]   ;;  %s52_s10 = scalar_lea.hbm %s137_s0, 256 }
   0x2   :  { %s14_s7 = sshll.u32 %s100_s6, 4  ;;  %p53_p0 = scmp.ne.s32.totalorder %s137_s0, %s52_s10  ;;  %s15_s7 = int_to_ptr.vmem [resolvable:$true] %s14_s7 }
   0x3   :  { %p56_p1 = scmp.lt.u32.totalorder %s52_s10, %s137_s0 }
   0x5   :  { %p58_p2 = pnand %p56_p1, %p53_p0 }
   0x7   :  { %61 = shalt.err (!%p58_p2)
}
   0x8   :  { %s62_s15 = scalar_lea.vmem %s15_s7, 256  ;;  %p67_p4 = scmp.lt.s32.totalorder %s15_s7, %s15_s7 }
   0x9   :  { %p63_p3 = scmp.ne.s32.totalorder %s15_s7, %s62_s15  ;;  %p68_p5 = scmp.lt.s32.totalorder %s62_s15, %s62_s15 }
   0xb   :  { %p69_p6 = por %p68_p5, %p67_p4 }
   0xd   :  { %p70_p7 = pnand %p69_p6, %p63_p3 }
   0xf   :  { %73 = shalt.err (!%p70_p7)
}
  0x10   :  { %17 = dma.hbm_to_vmem [thread:$0]  %s137_s0, 256, %s15_s7, [#allocation3]  }
  0x11   :  { %96 = dma.done.wait [#allocation3], 256  }
  0x12   :  { %97 = vsyncadd [#allocation3], 4294967040  ;;  %v21_v0 = vld [vmem:[#allocation2] sm:$0xff]  ;;  %s101_s18 = smov 1   ;;  %v22_v1 = vld [vmem:[#allocation2 + $0x8] sm:$0xff]  ;;  %v27_v2 = vlaneseq  ;;  %s102_s19 = smov [#allocation5]  }
  0x13   :  { %23 = vrot.lane.b32.xlu0 %v21_v0, %s101_s18  ;;  %s40_s20 = sshll.u32 %s102_s19, 4  ;;  %s41_s20 = int_to_ptr.vmem [resolvable:$true] %s40_s20 }
  0x14   :  { %v28_v3 = vand.u32 127, %v27_v2  ;;  %s74_s0 = scalar_lea.vmem %s41_s20, 256  ;;  %p79_p9 = scmp.lt.s32.totalorder %s41_s20, %s41_s20 }
  0x15   :  { %p75_p8 = scmp.ne.s32.totalorder %s41_s20, %s74_s0  ;;  %p80_p10 = scmp.lt.s32.totalorder %s74_s0, %s74_s0 }
  0x16   :  { %vm29_vm0 = vcmp.lt.s32.totalorder %v28_v3, 1 }
  0x17   :  { %25 = vrot.lane.b32.xlu0 %v22_v1, %s101_s18  ;;  %p81_p11 = por %p80_p10, %p79_p9 }
  0x19   :  { %p82_p12 = pnand %p81_p11, %p75_p8 }
  0x85   :  { %v24_v4 = vpop.permute.xlu0 %23 }
  0x89   :  { %v26_v5 = vpop.permute.xlu0 %25 }
  0x8a   :  { %v30_v6 = vsel %vm29_vm0, %v24_v4, %v26_v5  ;;  %v31_v7 = vsel %vm29_vm0, %v26_v5, %v24_v4 }
  0x8b   :  { %32 = vst [vmem:[#allocation5] sm:$0xff] %v31_v7  ;;  %33 = vst [vmem:[#allocation5 + $0x8] sm:$0xff] %v30_v6 }
  0x8c   :  { %85 = shalt.err (!%p82_p12)
}
  0x8d   :  { %s86_s23 = scalar_lea.hbm %s138_s1, 256 }
  0x8e   :  { %p87_p13 = scmp.ne.s32.totalorder %s138_s1, %s86_s23  ;;  %p90_p0 = scmp.lt.u32.totalorder %s86_s23, %s138_s1 }
  0x90   :  { %p92_p1 = pnand %p90_p0, %p87_p13 }
  0x92   :  { %95 = shalt.err (!%p92_p1)
}
  0x93   :  { %43 = dma.vmem_to_hbm [thread:$0]  %s41_s20, 256, %s138_s1, [#allocation4]  }
  0x94   :  { %98 = dma.done.wait [#allocation4], 256  }
  0x95   :  { %99 = vsyncadd [#allocation4], 4294967040 }
  0x96   :  { %47 = vsyncpa [#allocation3], 1 }
  0x97   :  { %48 = vsyncpa [#allocation4], 1 }

</bundles_post_ra>
